<compile_context>
chip_gen: v6e
topology: v6e:2x2x1
jax: 0.10.0
libtpu: 0.0.40
codegen_flags: <defaults>
</compile_context>

<pallas_src>
import functools

import jax
import jax.numpy as jnp
from jax.experimental import pallas as pl
from jax.experimental.pallas import tpu as pltpu

_LANE = 128
_ROW_ALIGN = 16   # multiple of 8 (f32 sublanes) and 16 (bf16 sublane packing) -> free reshapes


def _round_up(x, m):
    return (x + m - 1) // m * m


def _tpu_vmem_capacity_bytes():
    """Best-effort per-core VMEM capacity; conservative (v7x-sized) fallback."""
    try:
        info = pltpu.get_tpu_info()
        for attr in ("vmem_capacity_bytes", "vmem_bytes", "vmem_capacity"):
            v = getattr(info, attr, None)
            if v:
                return int(v)
    except Exception:
        pass
    return 64 << 20


_VMEM_CAP = _tpu_vmem_capacity_bytes()
# Bigger batch tiles on 128 MiB chips (v5e/v6e), smaller on v7x's 64 MiB VMEM.
_DEFAULT_BLOCK_B = 512 if _VMEM_CAP >= (96 << 20) else 256


def regressor_kernel(x_ref, w1_ref, b1_ref, w2_ref, b2_ref, cl_ref, d_ref):
    """One batch tile. x_ref is the stacked (3, tb, x_pad) anchor/positive/negative slab."""
    _, tb, x_pad = x_ref.shape

    # Free merge of the leading dims (tb is a multiple of 16 -> tile-aligned, no data movement).
    x = x_ref[...].reshape(3 * tb, x_pad)

    # fc: relu(x @ W1 + b1). MXU runs in the storage (compute) dtype, accumulates in f32;
    # bias add / ReLU / distance math stay on the f32 accumulator.
    emb = jnp.maximum(
        jnp.dot(x, w1_ref[...], preferred_element_type=jnp.float32) + b1_ref[...], 0.0)

    # cl head: emb @ W2 + b2 (LHS cast back to the MXU compute dtype).
    cl = jnp.dot(emb.astype(w2_ref.dtype), w2_ref[...],
                 preferred_element_type=jnp.float32) + b2_ref[...]
    cl_ref[...] = cl.reshape(3, tb, cl.shape[-1]).astype(cl_ref.dtype)

    anc_e = emb[0 * tb:1 * tb]
    pos_e = emb[1 * tb:2 * tb]
    neg_e = emb[2 * tb:3 * tb]
    dp = anc_e - pos_e
    dn = anc_e - neg_e
    d1 = jnp.sum(dp * dp, axis=1, keepdims=True)   # (tb, 1)
    d2 = jnp.sum(dn * dn, axis=1, keepdims=True)   # (tb, 1)

    # Narrow aux output: lane 0 = d1, lane 1 = d2 (only 2 lanes of real data, so the
    # output array itself is 2 lanes wide -> 64x fewer HBM writeback bytes than a 128-lane slab).
    lane = jax.lax.broadcasted_iota(jnp.int32, d_ref.shape, 1)
    d_ref[...] = jnp.where(lane == 0, d1, d2)


@functools.partial(jax.jit, static_argnames=("block_b", "compute_dtype"))
def regressor_forward(anchor, positive, negative, w1, b1, w2, b2, *,
                      block_b=None, compute_dtype=jnp.bfloat16):
    """anchor/positive/negative: [B, x_dim]; w1: [x_dim, h_dim]; w2: [h_dim, n_class].

    compute_dtype: MXU operand dtype (bf16 default, ~1e-2 numerics; jnp.float32 for exact).
    """
    B, x_dim = anchor.shape
    h_dim = w1.shape[1]
    n_class = w2.shape[1]
    if block_b is None:
        block_b = _DEFAULT_BLOCK_B

    # Lane-dense padded dims (zero padding is exact through linear + ReLU).
    x_pad = _round_up(x_dim, _LANE)
    h_pad = _round_up(h_dim, _LANE)
    n_pad = _round_up(n_class, _LANE)

    f32 = jnp.float32
    bpe_c = jnp.dtype(compute_dtype).itemsize

    # ---- batch tile selection --------------------------------------------------
    b16 = _round_up(max(B, 1), _ROW_ALIGN)
    n_tiles = max(-(-b16 // block_b), 1)
    # Guarantee >=2 grid steps when the batch allows it: the single "parallel" axis is what
    # shards work across v7x's two TensorCores (grid=(1,) leaves one TC idle).
    if n_tiles == 1 and b16 >= 2 * _ROW_ALIGN:
        n_tiles = 2
    tb = _round_up(-(-b16 // n_tiles), _ROW_ALIGN)

    def vmem_need(tb_):
        in_tile = 2 * 3 * tb_ * x_pad * bpe_c                                  # dbl-buffered input
        weights = (x_pad * h_pad + h_pad * n_pad) * bpe_c + (h_pad + n_pad) * 4  # single-buffered
        out_tile = 2 * (3 * tb_ * n_pad + tb_ * _LANE) * 4                     # dbl-buffered outputs
        live = 3 * tb_ * (h_pad * 4 + h_pad * bpe_c + n_pad * 4) + 2 * tb_ * h_pad * 4
        return in_tile + weights + out_tile + live + (4 << 20)

    vmem_cap = int(_VMEM_CAP * 0.85)
    while vmem_need(tb) > vmem_cap and tb > _ROW_ALIGN:
        tb = _round_up(tb // 2, _ROW_ALIGN)
    n_tiles = -(-b16 // tb)            # minimize batch padding for the final tb
    b_pad = tb * n_tiles
    grid = (n_tiles,)
    vmem_limit = int(min(max(vmem_need(tb), 16 << 20), vmem_cap))

    # ---- padding / stacking ----------------------------------------------------
    def pad2(a, rows, cols, dtype):
        a = a.astype(f32)
        a = jnp.pad(a, ((0, rows - a.shape[0]), (0, cols - a.shape[1])))
        return a.astype(dtype)

    # Stack the three streams wrapper-side: one lane-dense DMA slab per grid step,
    # no in-kernel concatenate.
    x_all = jnp.stack([
        pad2(anchor, b_pad, x_pad, compute_dtype),
        pad2(positive, b_pad, x_pad, compute_dtype),
        pad2(negative, b_pad, x_pad, compute_dtype),
    ], axis=0)                                                   # (3, b_pad, x_pad)

    w1_p = pad2(w1, x_pad, h_pad, compute_dtype)
    w2_p = pad2(w2, h_pad, n_pad, compute_dtype)
    b1_p = pad2(b1.reshape(1, -1), 1, h_pad, f32)
    b2_p = pad2(b2.reshape(1, -1), 1, n_pad, f32)

    # Constant-index weights: fetch once, single VMEM buffer.
    resident = dict(pipeline_mode=pl.Buffered(buffer_count=1))
    in_specs = [
        pl.BlockSpec((3, tb, x_pad), lambda i: (0, i, 0)),       # fused anc/pos/neg slab
        pl.BlockSpec((x_pad, h_pad), lambda i: (0, 0), **resident),   # W1
        pl.BlockSpec((1, h_pad), lambda i: (0, 0), **resident),       # b1
        pl.BlockSpec((h_pad, n_pad), lambda i: (0, 0), **resident),   # W2
        pl.BlockSpec((1, n_pad), lambda i: (0, 0), **resident),       # b2
    ]
    out_specs = (
        pl.BlockSpec((3, tb, n_pad), lambda i: (0, i, 0)),       # fused classifier slab
        pl.BlockSpec((tb, 2), lambda i: (i, 0)),                 # d1/d2 (2 lanes)
    )
    out_shapes = (
        jax.ShapeDtypeStruct((3, b_pad, n_pad), f32),
        jax.ShapeDtypeStruct((b_pad, 2), f32),
    )

    cost = pl.CostEstimate(
        flops=2 * 3 * b_pad * (x_pad * h_pad + h_pad * n_pad),
        transcendentals=0,
        bytes_accessed=(3 * b_pad * x_pad * bpe_c
                        + (x_pad * h_pad + h_pad * n_pad) * bpe_c + (h_pad + n_pad) * 4
                        + (3 * b_pad * n_pad + b_pad * 2) * 4),
    )

    cl_all, d_aux = pl.pallas_call(
        regressor_kernel,
        out_shape=out_shapes,
        grid=grid,
        in_specs=in_specs,
        out_specs=out_specs,
        compiler_params=pltpu.CompilerParams(
            dimension_semantics=("parallel",),
            vmem_limit_bytes=vmem_limit,
        ),
        cost_estimate=cost,
    )(x_all, w1_p, b1_p, w2_p, b2_p)

    # Slice the padded, fused outputs back to the module's shapes.
    anc_cl = cl_all[0, :B, :n_class]
    pos_cl = cl_all[1, :B, :n_class]
    neg_cl = cl_all[2, :B, :n_class]
    d1 = d_aux[:B, 0:1]
    d2 = d_aux[:B, 1:2]
    return anc_cl, pos_cl, neg_cl, d1, d2


def ref_forward(anchor, positive, negative, w1, b1, w2, b2):
    def predict(x):
        emb = jnp.maximum(x @ w1 + b1, 0.0)
        return emb @ w2 + b2, emb
    a_cl, a_e = predict(anchor)
    p_cl, p_e = predict(positive)
    n_cl, n_e = predict(negative)
    d1 = jnp.sum((a_e - p_e) ** 2, axis=1, keepdims=True)
    d2 = jnp.sum((a_e - n_e) ** 2, axis=1, keepdims=True)
    return a_cl, p_cl, n_cl, d1, d2


if __name__ == "__main__":
    # Small shapes consistent with Regressor(x_dim, n_class, h_dim).
    B, x_dim, h_dim, n_class = 8, 32, 16, 5

    key = jax.random.PRNGKey(0)
    k_a, k_p, k_n, k_w1, k_b1, k_w2, k_b2 = jax.random.split(key, 7)

    anchor = jax.random.normal(k_a, (B, x_dim), dtype=jnp.float32)
    positive = jax.random.normal(k_p, (B, x_dim), dtype=jnp.float32)
    negative = jax.random.normal(k_n, (B, x_dim), dtype=jnp.float32)

    # Deterministic parameter init (uniform like nn.Linear default, fixed seed).
    lim1 = 1.0 / jnp.sqrt(x_dim)
    lim2 = 1.0 / jnp.sqrt(h_dim)
    w1 = jax.random.uniform(k_w1, (x_dim, h_dim), minval=-lim1, maxval=lim1, dtype=jnp.float32)
    b1 = jax.random.uniform(k_b1, (1, h_dim), minval=-lim1, maxval=lim1, dtype=jnp.float32)
    w2 = jax.random.uniform(k_w2, (h_dim, n_class), minval=-lim2, maxval=lim2, dtype=jnp.float32)
    b2 = jax.random.uniform(k_b2, (1, n_class), minval=-lim2, maxval=lim2, dtype=jnp.float32)
    # NOTE: self.centers is only used in loss(), not forward(); not needed by the kernel.

    refs = ref_forward(anchor, positive, negative, w1, b1, w2, b2)

    # Default path: bf16 MXU operands, f32 accumulation (loosened tolerance).
    outs = regressor_forward(anchor, positive, negative, w1, b1, w2, b2)
    outs = jax.block_until_ready(outs)
    for o, r in zip(outs, refs):
        assert o.shape == r.shape, f"shape mismatch {o.shape} vs {r.shape}"
        assert jnp.allclose(o, r, atol=5e-2, rtol=5e-2), "bf16 path mismatch vs reference"

    # Exact f32 path (flag for users who need full f32 numerics).
    outs32 = regressor_forward(anchor, positive, negative, w1, b1, w2, b2,
                               compute_dtype=jnp.float32)
    outs32 = jax.block_until_ready(outs32)
    for o, r in zip(outs32, refs):
        assert jnp.allclose(o, r, atol=1e-4, rtol=1e-4), "f32 path mismatch vs reference"

    print("KERNEL_OK")
</pallas_src>

<mosaic_0001>
module attributes {stable_mosaic.version = 11 : i64} {
  func.func @regressor_kernel(%arg0: i32, %arg1: memref<3x16x128xbf16, #tpu.memory_space<vmem>>, %arg2: memref<128x128xbf16, #tpu.memory_space<vmem>>, %arg3: memref<1x128xf32, #tpu.memory_space<vmem>>, %arg4: memref<128x128xbf16, #tpu.memory_space<vmem>>, %arg5: memref<1x128xf32, #tpu.memory_space<vmem>>, %arg6: memref<3x16x128xf32, #tpu.memory_space<vmem>>, %arg7: memref<16x2xf32, #tpu.memory_space<vmem>>) attributes {dimension_semantics = [#tpu.dimension_semantics<parallel>], iteration_bounds = array<i64: 1>, scalar_prefetch = 0 : i64, scratch_operands = 0 : i64, tpu.core_type = #tpu.core_type<tc>, window_params = [{transform_indices = @transform_0, window_bounds = array<i64: 3, 16, 128>}, {pipeline_mode = #tpu.pipeline_mode<synchronous>, transform_indices = @transform_1, window_bounds = array<i64: 128, 128>}, {pipeline_mode = #tpu.pipeline_mode<synchronous>, transform_indices = @transform_2, window_bounds = array<i64: 1, 128>}, {pipeline_mode = #tpu.pipeline_mode<synchronous>, transform_indices = @transform_3, window_bounds = array<i64: 128, 128>}, {pipeline_mode = #tpu.pipeline_mode<synchronous>, transform_indices = @transform_4, window_bounds = array<i64: 1, 128>}, {transform_indices = @transform_5, window_bounds = array<i64: 3, 16, 128>}, {transform_indices = @transform_6, window_bounds = array<i64: 16, 2>}]} {
    %c0 = arith.constant 0 : index
    %c0_0 = arith.constant 0 : index
    %c0_1 = arith.constant 0 : index
    %0 = vector.load %arg1[%c0, %c0_0, %c0_1] : memref<3x16x128xbf16, #tpu.memory_space<vmem>>, vector<3x16x128xbf16>
    %1 = vector.shape_cast %0 : vector<3x16x128xbf16> to vector<48x128xbf16>
    %c0_2 = arith.constant 0 : index
    %c0_3 = arith.constant 0 : index
    %2 = vector.load %arg2[%c0_2, %c0_3] : memref<128x128xbf16, #tpu.memory_space<vmem>>, vector<128x128xbf16>
    %cst = arith.constant dense<0.000000e+00> : vector<48x128xf32>
    %3 = tpu.matmul %1, %2, %cst {dimension_numbers = #tpu.dot_dimension_numbers<[1], [0], [0], [1], [0, 0, 1, 1], [], []>} : vector<48x128xbf16>, vector<128x128xbf16>, vector<48x128xf32> -> vector<48x128xf32>
    %c0_4 = arith.constant 0 : index
    %c0_5 = arith.constant 0 : index
    %4 = vector.load %arg3[%c0_4, %c0_5] : memref<1x128xf32, #tpu.memory_space<vmem>>, vector<1x128xf32>
    %5 = vector.broadcast %4 : vector<1x128xf32> to vector<48x128xf32>
    %6 = arith.addf %3, %5 : vector<48x128xf32>
    %cst_6 = arith.constant 0.000000e+00 : f32
    %7 = vector.broadcast %cst_6 : f32 to vector<48x128xf32>
    %8 = arith.maximumf %6, %7 : vector<48x128xf32>
    %9 = arith.truncf %8 : vector<48x128xf32> to vector<48x128xbf16>
    %c0_7 = arith.constant 0 : index
    %c0_8 = arith.constant 0 : index
    %10 = vector.load %arg4[%c0_7, %c0_8] : memref<128x128xbf16, #tpu.memory_space<vmem>>, vector<128x128xbf16>
    %cst_9 = arith.constant dense<0.000000e+00> : vector<48x128xf32>
    %11 = tpu.matmul %9, %10, %cst_9 {dimension_numbers = #tpu.dot_dimension_numbers<[1], [0], [0], [1], [0, 0, 1, 1], [], []>} : vector<48x128xbf16>, vector<128x128xbf16>, vector<48x128xf32> -> vector<48x128xf32>
    %c0_10 = arith.constant 0 : index
    %c0_11 = arith.constant 0 : index
    %12 = vector.load %arg5[%c0_10, %c0_11] : memref<1x128xf32, #tpu.memory_space<vmem>>, vector<1x128xf32>
    %13 = vector.broadcast %12 : vector<1x128xf32> to vector<48x128xf32>
    %14 = arith.addf %11, %13 : vector<48x128xf32>
    %15 = vector.shape_cast %14 : vector<48x128xf32> to vector<3x16x128xf32>
    %c0_12 = arith.constant 0 : index
    %c0_13 = arith.constant 0 : index
    %c0_14 = arith.constant 0 : index
    %16 = vector.load %arg6[%c0_12, %c0_13, %c0_14] : memref<3x16x128xf32, #tpu.memory_space<vmem>>, vector<3x16x128xf32>
    tpu.vector_store %arg6[%c0_12, %c0_13, %c0_14], %15 {strides = array<i32>} : memref<3x16x128xf32, #tpu.memory_space<vmem>>, vector<3x16x128xf32>,
    %17 = vector.extract_strided_slice %8 {offsets = [0, 0], sizes = [16, 128], strides = [1, 1]} : vector<48x128xf32> to vector<16x128xf32>
    %18 = vector.extract_strided_slice %8 {offsets = [16, 0], sizes = [16, 128], strides = [1, 1]} : vector<48x128xf32> to vector<16x128xf32>
    %19 = vector.extract_strided_slice %8 {offsets = [32, 0], sizes = [16, 128], strides = [1, 1]} : vector<48x128xf32> to vector<16x128xf32>
    %20 = arith.subf %17, %18 : vector<16x128xf32>
    %21 = arith.subf %17, %19 : vector<16x128xf32>
    %22 = arith.mulf %20, %20 : vector<16x128xf32>
    %cst_15 = arith.constant dense<0.000000e+00> : vector<16xf32>
    %23 = vector.multi_reduction <add>, %22, %cst_15 [1] : vector<16x128xf32> to vector<16xf32>
    %24 = vector.shape_cast %23 : vector<16xf32> to vector<16x1xf32>
    %25 = arith.mulf %21, %21 : vector<16x128xf32>
    %cst_16 = arith.constant dense<0.000000e+00> : vector<16xf32>
    %26 = vector.multi_reduction <add>, %25, %cst_16 [1] : vector<16x128xf32> to vector<16xf32>
    %27 = vector.shape_cast %26 : vector<16xf32> to vector<16x1xf32>
    %28 = tpu.iota {dimensions = array<i32: 1>} : vector<16x2xi32>
    %c0_i32 = arith.constant 0 : i32
    %29 = vector.broadcast %c0_i32 : i32 to vector<16x2xi32>
    %30 = arith.cmpi eq, %28, %29 : vector<16x2xi32>
    %31 = vector.shape_cast %24 : vector<16x1xf32> to vector<16x1xf32>
    %32 = vector.broadcast %31 : vector<16x1xf32> to vector<16x2xf32>
    %33 = vector.shape_cast %27 : vector<16x1xf32> to vector<16x1xf32>
    %34 = vector.broadcast %33 : vector<16x1xf32> to vector<16x2xf32>
    %35 = arith.select %30, %32, %34 : vector<16x2xi1>, vector<16x2xf32>
    %c0_17 = arith.constant 0 : index
    %c0_18 = arith.constant 0 : index
    %36 = vector.load %arg7[%c0_17, %c0_18] : memref<16x2xf32, #tpu.memory_space<vmem>>, vector<16x2xf32>
    tpu.vector_store %arg7[%c0_17, %c0_18], %35 {strides = array<i32>} : memref<16x2xf32, #tpu.memory_space<vmem>>, vector<16x2xf32>,
    return
  }
  func.func @transform_0(%arg0: i32) -> (i32, i32, i32) {
    %c0_i32 = arith.constant 0 : i32
    %c0_i32_0 = arith.constant 0 : i32
    %c0_i32_1 = arith.constant 0 : i32
    return %c0_i32, %arg0, %c0_i32_0 : i32, i32, i32
  }
  func.func @transform_1(%arg0: i32) -> (i32, i32) {
    %c0_i32 = arith.constant 0 : i32
    %c0_i32_0 = arith.constant 0 : i32
    %c0_i32_1 = arith.constant 0 : i32
    return %c0_i32, %c0_i32_0 : i32, i32
  }
  func.func @transform_2(%arg0: i32) -> (i32, i32) {
    %c0_i32 = arith.constant 0 : i32
    %c0_i32_0 = arith.constant 0 : i32
    %c0_i32_1 = arith.constant 0 : i32
    return %c0_i32, %c0_i32_0 : i32, i32
  }
  func.func @transform_3(%arg0: i32) -> (i32, i32) {
    %c0_i32 = arith.constant 0 : i32
    %c0_i32_0 = arith.constant 0 : i32
    %c0_i32_1 = arith.constant 0 : i32
    return %c0_i32, %c0_i32_0 : i32, i32
  }
  func.func @transform_4(%arg0: i32) -> (i32, i32) {
    %c0_i32 = arith.constant 0 : i32
    %c0_i32_0 = arith.constant 0 : i32
    %c0_i32_1 = arith.constant 0 : i32
    return %c0_i32, %c0_i32_0 : i32, i32
  }
  func.func @transform_5(%arg0: i32) -> (i32, i32, i32) {
    %c0_i32 = arith.constant 0 : i32
    %c0_i32_0 = arith.constant 0 : i32
    %c0_i32_1 = arith.constant 0 : i32
    return %c0_i32, %arg0, %c0_i32_0 : i32, i32, i32
  }
  func.func @transform_6(%arg0: i32) -> (i32, i32) {
    %c0_i32 = arith.constant 0 : i32
    %c0_i32_0 = arith.constant 0 : i32
    return %arg0, %c0_i32 : i32, i32
  }
}

</mosaic_0001>

<bundles_post_ra>
// kernel: regressor_forward.1
= control target key start
LH: loop header
LB: loop body
LE: loop exit
PB: predicated region body
PF: predicated region fallthrough
CT: control target
= control target key end

     0   :  { %v470_v0 = vmov 0.0   ;;  %vm471_vm0 = vmmov 0   ;;  %v334_v56 = vlaneseq  ;;  %vm339_vm2 = vcmask 15360   ;;  %s622_s1 = inlined_call_operand.vmem [shape: bf16[128,128], index: 1, kind: input, shape index: {}]   ;;  %s623_s0 = inlined_call_operand.vmem [shape: bf16[3,16,128], index: 0, kind: input, shape index: {}]   ;;  %s624_s3 = inlined_call_operand.vmem [shape: bf16[128,128], index: 3, kind: input, shape index: {}]   ;;  %s625_s2 = inlined_call_operand.vmem [shape: f32[1,128], index: 2, kind: input, shape index: {}]   ;;  %s626_s6 = inlined_call_operand.vmem [shape: f32[16,2], index: 6, kind: output, shape index: {1}]   ;;  %s627_s4 = inlined_call_operand.vmem [shape: f32[1,128], index: 4, kind: input, shape index: {}]   ;;  %s628_s5 = inlined_call_operand.vmem [shape: f32[3,16,128], index: 5, kind: output, shape index: {0}]  }
   0x1   :  { %393 = vmatprep.subr.bf16.mxu0 %v470_v0  ;;  %v451_v1 = vld [vmem:[%s622_s1 + $0x38] sm:$0xff]   ;;  %409 = vmatprep.mubr.msk.bf16.mxu0 %vm471_vm0, %v470_v0  ;;  %v452_v2 = vld [vmem:[%s622_s1 + $0x30] sm:$0xff]   ;;  %v453_v3 = vld [vmem:[%s622_s1 + $0x28] sm:$0xff]  }
   0x2   :  { %421 = vmatprep.subr.bf16.mxu1 %v470_v0  ;;  %437 = vmatprep.mubr.msk.bf16.mxu1 %vm471_vm0, %v470_v0  ;;  %v454_v4 = vld [vmem:[%s622_s1 + $0x20] sm:$0xff]   ;;  %v462_v5 = vld [vmem:[%s624_s3 + $0x38] sm:$0xff]   ;;  %v463_v6 = vld [vmem:[%s624_s3 + $0x30] sm:$0xff]   ;;  %v335_v57 = vand.u32 127, %v334_v56 }
   0x3   :  { %394 = vmatpush3.bf16.msra.mxu0 %v451_v1  ;;  %422 = vmatpush3.bf16.msra.mxu1 %v462_v5  ;;  %v455_v7 = vld [vmem:[%s622_s1 + $0x18] sm:$0xff]   ;;  %v464_v8 = vld [vmem:[%s624_s3 + $0x28] sm:$0xff]   ;;  %v456_v9 = vld [vmem:[%s622_s1 + $0x10] sm:$0xff]  }
   0x4   :  { %395 = vmatprep.subr.bf16.mxu0 %v470_v0  ;;  %423 = vmatprep.subr.bf16.mxu1 %v470_v0  ;;  %v465_v10 = vld [vmem:[%s624_s3 + $0x20] sm:$0xff]   ;;  %v457_v11 = vld [vmem:[%s622_s1 + $0x8] sm:$0xff]   ;;  %v466_v12 = vld [vmem:[%s624_s3 + $0x18] sm:$0xff]   ;;  %vm336_vm1 = vcmp.eq.s32.totalorder %v335_v57, 0 }
   0x5   :  { %v458_v13 = vld [vmem:[%s622_s1] sm:$0xff]   ;;  %v460_v15 = vld [vmem:[%s623_s0 + $0x8] sm:$0xff]   ;;  %v461_v16 = vld [vmem:[%s623_s0 + $0x10] sm:$0xff]  }
   0x6   :  { %v459_v14 = vld [vmem:[%s623_s0] sm:$0xff]   ;;  %v467_v17 = vld [vmem:[%s624_s3 + $0x10] sm:$0xff]   ;;  %v468_v18 = vld [vmem:[%s624_s3 + $0x8] sm:$0xff]  }
   0x7   :  { %396 = vmatpush3.bf16.msra.mxu0 %v452_v2  ;;  %424 = vmatpush3.bf16.msra.mxu1 %v463_v6  ;;  %v469_v19 = vld [vmem:[%s624_s3] sm:$0xff]  }
   0x8   :  { %397 = vmatprep.subr.bf16.mxu0 %v470_v0  ;;  %425 = vmatprep.subr.bf16.mxu1 %v470_v0  ;;  %v350_v20 = vld [vmem:[%s625_s2] ss:$0 sm:$0xff] }
   0xb   :  { %398 = vmatpush3.bf16.msra.mxu0 %v453_v3  ;;  %426 = vmatpush3.bf16.msra.mxu1 %v464_v8 }
   0xc   :  { %399 = vmatprep.subr.bf16.mxu0 %v470_v0  ;;  %427 = vmatprep.subr.bf16.mxu1 %v470_v0 }
   0xf   :  { %400 = vmatpush3.bf16.msra.mxu0 %v454_v4  ;;  %428 = vmatpush3.bf16.msra.mxu1 %v465_v10 }
  0x10   :  { %401 = vmatprep.subr.bf16.mxu0 %v470_v0  ;;  %429 = vmatprep.subr.bf16.mxu1 %v470_v0 }
  0x13   :  { %402 = vmatpush3.bf16.msra.mxu0 %v455_v7  ;;  %430 = vmatpush3.bf16.msra.mxu1 %v466_v12 }
  0x14   :  { %403 = vmatprep.subr.bf16.mxu0 %v470_v0  ;;  %431 = vmatprep.subr.bf16.mxu1 %v470_v0 }
  0x17   :  { %404 = vmatpush3.bf16.msra.mxu0 %v456_v9  ;;  %432 = vmatpush3.bf16.msra.mxu1 %v467_v17 }
  0x18   :  { %405 = vmatprep.subr.bf16.mxu0 %v470_v0  ;;  %433 = vmatprep.subr.bf16.mxu1 %v470_v0 }
  0x1b   :  { %406 = vmatpush3.bf16.msra.mxu0 %v457_v11  ;;  %434 = vmatpush3.bf16.msra.mxu1 %v468_v18 }
  0x1c   :  { %407 = vmatprep.subr.bf16.mxu0 %v470_v0  ;;  %435 = vmatprep.subr.bf16.mxu1 %v470_v0 }
  0x1f   :  { %408 = vmatpush3.bf16.msra.mxu0 %v458_v13  ;;  %436 = vmatpush3.bf16.msra.mxu1 %v469_v19 }
  0x22   :  { %410 = vmatmul.mubr.bf16.vlgmr.msra.gmra.mxu0 %v459_v14 }
  0x23   :  { %413 = vmatprep.mubr.msk.bf16.mxu0 %vm471_vm0, %v470_v0 }
  0x2a   :  { %414 = vmatmul.mubr.bf16.gmra.mxu0 %v460_v15 }
  0x2b   :  { %417 = vmatprep.mubr.msk.bf16.mxu0 %vm471_vm0, %v470_v0 }
  0x32   :  { %418 = vmatmul.mubr.bf16.gmra.mxu0 %v461_v16 }
  0xe2   :  { %v152_v21 = vpop.f32.mrf.mxu0 }
  0xe3   :  { %v153_v23 = vadd.f32 %v350_v20, %v152_v21 }
  0xe4   :  { %v411_v22 = vpop.f32.mrf.mxu0 }
  0xe5   :  { %v175_v27 = vmax.f32 %v153_v23, 0.0 }
  0xe6   :  { %v155_v24 = vpop.f32.mrf.mxu0 }
  0xe7   :  { %v156_v25 = vadd.f32 %v350_v20, %v155_v24 }
  0xe8   :  { %v412_v26 = vpop.f32.mrf.mxu0 }
  0xe9   :  { %v176_v28 = vmax.f32 %v156_v25, 0.0 }
  0xea   :  { %v160_v29 = vpop.f32.mrf.mxu0 }
  0xeb   :  { %v161_v30 = vadd.f32 %v350_v20, %v160_v29  ;;  %v181_v31 = vpack.c.bf16 %v176_v28, %v175_v27 }
  0xec   :  { %v415_v32 = vpop.f32.mrf.mxu0 }
  0xed   :  { %v177_v33 = vmax.f32 %v161_v30, 0.0  ;;  %438 = vmatmul.mubr.bf16.vlgmr.msra.gmra.mxu1 %v181_v31 }
  0xee   :  { %v163_v34 = vpop.f32.mrf.mxu0  ;;  %441 = vmatprep.mubr.msk.bf16.mxu1 %vm471_vm0, %v470_v0 }
  0xef   :  { %v164_v35 = vadd.f32 %v350_v20, %v163_v34  ;;  %v318_v36 = vsub.f32 %v175_v27, %v177_v33 }
  0xf0   :  { %v416_v37 = vpop.f32.mrf.mxu0 }
  0xf1   :  { %v178_v38 = vmax.f32 %v164_v35, 0.0  ;;  %v322_v39 = vmul.f32 %v318_v36, %v318_v36 }
  0xf2   :  { %v168_v40 = vpop.f32.mrf.mxu0 }
  0xf3   :  { %v182_v41 = vpack.c.bf16 %v178_v38, %v177_v33  ;;  %v169_v42 = vadd.f32 %v350_v20, %v168_v40  ;;  %324 = vadd.xlane.f32.xlu0 %v322_v39  ;;  %v319_v43 = vsub.f32 %v176_v28, %v178_v38 }
  0xf4   :  { %v419_v44 = vpop.f32.mrf.mxu0 }
  0xf5   :  { %v179_v45 = vmax.f32 %v169_v42, 0.0  ;;  %442 = vmatmul.mubr.bf16.gmra.mxu1 %v182_v41  ;;  %v323_v46 = vmul.f32 %v319_v43, %v319_v43 }
  0xf6   :  { %v171_v47 = vpop.f32.mrf.mxu0  ;;  %445 = vmatprep.mubr.msk.bf16.mxu1 %vm471_vm0, %v470_v0  ;;  %v362_v0 = vld [vmem:[%s627_s4] ss:$0 sm:$0xff] }
  0xf7   :  { %v172_v48 = vadd.f32 %v350_v20, %v171_v47  ;;  %326 = vadd.xlane.f32.xlu0 %v323_v46  ;;  %v320_v49 = vsub.f32 %v175_v27, %v179_v45 }
  0xf8   :  { %v420_v50 = vpop.f32.mrf.mxu0 }
  0xf9   :  { %v180_v51 = vmax.f32 %v172_v48, 0.0  ;;  %v328_v52 = vmul.f32 %v320_v49, %v320_v49 }
  0xfb   :  { %v183_v53 = vpack.c.bf16 %v180_v51, %v179_v45  ;;  %330 = vadd.xlane.f32.xlu1 %v328_v52  ;;  %v321_v54 = vsub.f32 %v176_v28, %v180_v51 }
  0xfd   :  { %446 = vmatmul.mubr.bf16.gmra.mxu1 %v183_v53  ;;  %v329_v55 = vmul.f32 %v321_v54, %v321_v54 }
  0xff   :  { %332 = vadd.xlane.f32.xlu1 %v329_v55 }
 0x17c   :  { %v325_v58 = vpop.xlane.xlu0 %324 }
 0x180   :  { %v327_v61 = vpop.xlane.xlu0 %326 }
 0x184   :  { %v331_v59 = vpop.xlane.xlu1 %330 }
 0x185   :  { %v337_v60 = vsel %vm336_vm1, %v325_v58, %v331_v59 }
 0x186   :  { %340 = vst.msk [vmem:[%s626_s6] sm:$0xff] %vm339_vm2, %v337_v60 }
 0x188   :  { %v333_v62 = vpop.xlane.xlu1 %332 }
 0x189   :  { %v338_v63 = vsel %vm336_vm1, %v327_v61, %v333_v62 }
 0x18a   :  { %341 = vst.msk [vmem:[%s626_s6 + $0x8] sm:$0xff] %vm339_vm2, %v338_v63 }
 0x1ad   :  { %v289_v1 = vpop.f32.mrf.mxu1 }
 0x1ae   :  { %v290_v2 = vadd.f32 %v362_v0, %v289_v1 }
 0x1af   :  { %v439_v3 = vpop.f32.mrf.mxu1 }
 0x1b0   :  { %312 = vst [vmem:[%s628_s5] sm:$0xff] %v290_v2 }
 0x1b1   :  { %v292_v4 = vpop.f32.mrf.mxu1 }
 0x1b2   :  { %v293_v5 = vadd.f32 %v362_v0, %v292_v4 }
 0x1b3   :  { %v440_v6 = vpop.f32.mrf.mxu1 }
 0x1b4   :  { %313 = vst [vmem:[%s628_s5 + $0x8] sm:$0xff] %v293_v5 }
 0x1b5   :  { %v297_v7 = vpop.f32.mrf.mxu1 }
 0x1b6   :  { %v298_v8 = vadd.f32 %v362_v0, %v297_v7 }
 0x1b7   :  { %v443_v9 = vpop.f32.mrf.mxu1 }
 0x1b8   :  { %314 = vst [vmem:[%s628_s5 + $0x10] sm:$0xff] %v298_v8 }
 0x1b9   :  { %v300_v10 = vpop.f32.mrf.mxu1 }
 0x1ba   :  { %v301_v11 = vadd.f32 %v362_v0, %v300_v10 }
 0x1bb   :  { %v444_v12 = vpop.f32.mrf.mxu1 }
 0x1bc   :  { %315 = vst [vmem:[%s628_s5 + $0x18] sm:$0xff] %v301_v11 }
 0x1bd   :  { %v305_v13 = vpop.f32.mrf.mxu1 }
 0x1be   :  { %v306_v14 = vadd.f32 %v362_v0, %v305_v13 }
 0x1bf   :  { %v447_v15 = vpop.f32.mrf.mxu1 }
 0x1c0   :  { %316 = vst [vmem:[%s628_s5 + $0x20] sm:$0xff] %v306_v14 }
 0x1c1   :  { %v308_v16 = vpop.f32.mrf.mxu1 }
 0x1c2   :  { %v309_v17 = vadd.f32 %v362_v0, %v308_v16 }
 0x1c3   :  { %v448_v18 = vpop.f32.mrf.mxu1 }
 0x1c4   :  { %317 = vst [vmem:[%s628_s5 + $0x28] sm:$0xff] %v309_v17 }

</bundles_post_ra>
